<compile_context>
chip_gen: v6e
topology: v6e:2x2x1
jax: 0.10.0
libtpu: 0.0.40
codegen_flags: <defaults>
</compile_context>

<pallas_src>
import jax
import jax.numpy as jnp
from jax.experimental import pallas as pl
from jax.experimental.pallas import tpu as pltpu


def _elu(x):
    # PyTorch nn.ELU(alpha=1.0)
    return jnp.where(x > 0, x, jnp.exp(x) - 1.0)


# ---------------------------------------------------------------------------
# Fused kernel: ELU -> [linear1|linear2] matmul -> linear3(a^2) matmul
#               -> biases -> l1*l2 + l3   (one row-tile per grid step)
# ---------------------------------------------------------------------------
def _afq_kernel(x_ref, w12_ref, b12_ref, w3_ref, b3_ref, o_ref):
    x = x_ref[...].astype(jnp.float32)                     # (TM, F)
    a = _elu(x)                                            # ELU pre-activation
    # linear1 / linear2 fused into a single (F, 2) MXU matmul over a.
    y12 = jnp.dot(a, w12_ref[...].astype(jnp.float32),
                  preferred_element_type=jnp.float32) + b12_ref[...]   # (TM, 2)
    # linear3 over a^2.
    y3 = jnp.dot(a * a, w3_ref[...].astype(jnp.float32),
                 preferred_element_type=jnp.float32) + b3_ref[...]     # (TM, 1)
    out = y12[:, 0:1] * y12[:, 1:2] + y3                   # (TM, 1)
    o_ref[...] = out.astype(o_ref.dtype)


def _round_up(a, b):
    return (a + b - 1) // b * b


def af_quadratic(x, params, *, block_rows=512):
    """Pallas forward of AFQuadratic.  x: (..., in_features) -> (...)."""
    F = x.shape[-1]
    batch_shape = x.shape[:-1]
    M = 1
    for d in batch_shape:
        M *= d
    x2 = x.reshape(M, F)

    # Row-tile size: multiple of 8 (sublane), capped so big batches pipeline
    # (and stay well inside the 64 MiB VMEM of v7x).
    TM = min(block_rows, _round_up(max(M, 1), 8))
    M_pad = _round_up(M, TM)
    if M_pad != M:
        x2 = jnp.pad(x2, ((0, M_pad - M), (0, 0)))

    # Stack linear1/linear2 weights -> (F, 2); linear3 weight -> (F, 1).
    w12 = jnp.concatenate([params["w1"], params["w2"]], axis=0).T      # (F, 2)
    b12 = jnp.concatenate([params["b1"], params["b2"]]).reshape(1, 2)  # (1, 2)
    w3 = params["w3"].T                                                # (F, 1)
    b3 = params["b3"].reshape(1, 1)                                    # (1, 1)

    out = pl.pallas_call(
        _afq_kernel,
        out_shape=jax.ShapeDtypeStruct((M_pad, 1), x.dtype),
        grid_spec=pltpu.PrefetchScalarGridSpec(
            num_scalar_prefetch=0,
            grid=(M_pad // TM,),
            in_specs=[
                pl.BlockSpec((TM, F), lambda i: (i, 0)),   # activation row tile
                pl.BlockSpec((F, 2), lambda i: (0, 0)),    # stacked w1|w2
                pl.BlockSpec((1, 2), lambda i: (0, 0)),    # stacked b1|b2
                pl.BlockSpec((F, 1), lambda i: (0, 0)),    # w3
                pl.BlockSpec((1, 1), lambda i: (0, 0)),    # b3
            ],
            out_specs=pl.BlockSpec((TM, 1), lambda i: (i, 0)),
        ),
        compiler_params=pltpu.CompilerParams(
            dimension_semantics=("parallel",),
        ),
    )(x2, w12, b12, w3, b3)

    return out[:M, 0].reshape(batch_shape)


# ---------------------------------------------------------------------------
# Pure-JAX reference (validation only)
# ---------------------------------------------------------------------------
def af_quadratic_ref(x, params):
    a = _elu(x)
    l1 = a @ params["w1"].T + params["b1"]
    l2 = a @ params["w2"].T + params["b2"]
    l3 = (a * a) @ params["w3"].T + params["b3"]
    return (l1 * l2 + l3)[..., 0]


if __name__ == "__main__":
    F = 32
    key = jax.random.PRNGKey(0)
    k1, k2, k3, k4, k5, k6, kx1, kx2 = jax.random.split(key, 8)

    params = {
        "w1": 0.1 * jax.random.normal(k1, (1, F), jnp.float32),
        "b1": 0.1 * jax.random.normal(k2, (1,), jnp.float32),
        "w2": 0.1 * jax.random.normal(k3, (1, F), jnp.float32),
        "b2": 0.1 * jax.random.normal(k4, (1,), jnp.float32),
        "w3": 0.1 * jax.random.normal(k5, (1, F), jnp.float32),
        "b3": 0.1 * jax.random.normal(k6, (1,), jnp.float32),
    }

    # Small case: batch=2, seq=8, in_features=32  (single grid step).
    x = jax.random.normal(kx1, (2, 8, F), jnp.float32)
    out = jax.block_until_ready(af_quadratic(x, params))
    ref = jax.block_until_ready(af_quadratic_ref(x, params))
    assert out.shape == ref.shape == (2, 8), (out.shape, ref.shape)
    assert jnp.allclose(out, ref, atol=1e-5, rtol=1e-5), (
        f"mismatch (small): max err {float(jnp.max(jnp.abs(out - ref)))}")

    # Ragged case: exercises row padding and a multi-step ('parallel') grid.
    x2 = jax.random.normal(kx2, (3, 50, F), jnp.float32)
    out2 = jax.block_until_ready(af_quadratic(x2, params, block_rows=64))
    ref2 = jax.block_until_ready(af_quadratic_ref(x2, params))
    assert out2.shape == ref2.shape == (3, 50), (out2.shape, ref2.shape)
    assert jnp.allclose(out2, ref2, atol=1e-5, rtol=1e-5), (
        f"mismatch (tiled): max err {float(jnp.max(jnp.abs(out2 - ref2)))}")

    print("KERNEL_OK")
</pallas_src>

<mosaic_0001>
module attributes {stable_mosaic.version = 11 : i64} {
  func.func @_afq_kernel(%arg0: i32, %arg1: memref<16x32xf32, #tpu.memory_space<vmem>>, %arg2: memref<32x2xf32, #tpu.memory_space<vmem>>, %arg3: memref<1x2xf32, #tpu.memory_space<vmem>>, %arg4: memref<32x1xf32, #tpu.memory_space<vmem>>, %arg5: memref<1x1xf32, #tpu.memory_space<vmem>>, %arg6: memref<16x1xf32, #tpu.memory_space<vmem>>) attributes {dimension_semantics = [#tpu.dimension_semantics<parallel>], iteration_bounds = array<i64: 1>, scalar_prefetch = 0 : i64, scratch_operands = 0 : i64, tpu.core_type = #tpu.core_type<tc>, window_params = [{transform_indices = @transform_0, window_bounds = array<i64: 16, 32>}, {pipeline_mode = #tpu.pipeline_mode<synchronous>, transform_indices = @transform_1, window_bounds = array<i64: 32, 2>}, {pipeline_mode = #tpu.pipeline_mode<synchronous>, transform_indices = @transform_2, window_bounds = array<i64: 1, 2>}, {pipeline_mode = #tpu.pipeline_mode<synchronous>, transform_indices = @transform_3, window_bounds = array<i64: 32, 1>}, {pipeline_mode = #tpu.pipeline_mode<synchronous>, transform_indices = @transform_4, window_bounds = array<i64: 1, 1>}, {transform_indices = @transform_5, window_bounds = array<i64: 16, 1>}]} {
    %c0 = arith.constant 0 : index
    %c0_0 = arith.constant 0 : index
    %0 = vector.load %arg1[%c0, %c0_0] : memref<16x32xf32, #tpu.memory_space<vmem>>, vector<16x32xf32>
    %cst = arith.constant 0.000000e+00 : f32
    %1 = vector.broadcast %cst : f32 to vector<16x32xf32>
    %2 = arith.cmpf ogt, %0, %1 : vector<16x32xf32>
    %3 = math.exp %0 : vector<16x32xf32>
    %cst_1 = arith.constant 1.000000e+00 : f32
    %4 = vector.broadcast %cst_1 : f32 to vector<16x32xf32>
    %5 = arith.subf %3, %4 : vector<16x32xf32>
    %6 = arith.select %2, %0, %5 : vector<16x32xi1>, vector<16x32xf32>
    %c0_2 = arith.constant 0 : index
    %c0_3 = arith.constant 0 : index
    %7 = vector.load %arg2[%c0_2, %c0_3] : memref<32x2xf32, #tpu.memory_space<vmem>>, vector<32x2xf32>
    %cst_4 = arith.constant dense<0.000000e+00> : vector<16x2xf32>
    %8 = tpu.matmul %6, %7, %cst_4 {dimension_numbers = #tpu.dot_dimension_numbers<[1], [0], [0], [1], [0, 0, 1, 1], [], []>} : vector<16x32xf32>, vector<32x2xf32>, vector<16x2xf32> -> vector<16x2xf32>
    %c0_5 = arith.constant 0 : index
    %c0_6 = arith.constant 0 : index
    %9 = vector.load %arg3[%c0_5, %c0_6] : memref<1x2xf32, #tpu.memory_space<vmem>>, vector<1x2xf32>
    %10 = vector.broadcast %9 : vector<1x2xf32> to vector<16x2xf32>
    %11 = arith.addf %8, %10 : vector<16x2xf32>
    %12 = arith.mulf %6, %6 : vector<16x32xf32>
    %c0_7 = arith.constant 0 : index
    %c0_8 = arith.constant 0 : index
    %13 = vector.load %arg4[%c0_7, %c0_8] : memref<32x1xf32, #tpu.memory_space<vmem>>, vector<32x1xf32>
    %cst_9 = arith.constant dense<0.000000e+00> : vector<16x1xf32>
    %14 = tpu.matmul %12, %13, %cst_9 {dimension_numbers = #tpu.dot_dimension_numbers<[1], [0], [0], [1], [0, 0, 1, 1], [], []>} : vector<16x32xf32>, vector<32x1xf32>, vector<16x1xf32> -> vector<16x1xf32>
    %c0_10 = arith.constant 0 : index
    %c0_11 = arith.constant 0 : index
    %15 = vector.load %arg5[%c0_10, %c0_11] : memref<1x1xf32, #tpu.memory_space<vmem>>, vector<1x1xf32>
    %16 = vector.broadcast %15 : vector<1x1xf32> to vector<16x1xf32>
    %17 = arith.addf %14, %16 : vector<16x1xf32>
    %18 = vector.extract_strided_slice %11 {offsets = [0, 0], sizes = [16, 1], strides = [1, 1]} : vector<16x2xf32> to vector<16x1xf32>
    %19 = vector.extract_strided_slice %11 {offsets = [0, 1], sizes = [16, 1], strides = [1, 1]} : vector<16x2xf32> to vector<16x1xf32>
    %20 = arith.mulf %18, %19 : vector<16x1xf32>
    %21 = arith.addf %20, %17 : vector<16x1xf32>
    %c0_12 = arith.constant 0 : index
    %c0_13 = arith.constant 0 : index
    %22 = vector.load %arg6[%c0_12, %c0_13] : memref<16x1xf32, #tpu.memory_space<vmem>>, vector<16x1xf32>
    tpu.vector_store %arg6[%c0_12, %c0_13], %21 {strides = array<i32>} : memref<16x1xf32, #tpu.memory_space<vmem>>, vector<16x1xf32>,
    return
  }
  func.func @transform_0(%arg0: i32) -> (i32, i32) {
    %c0_i32 = arith.constant 0 : i32
    %c0_i32_0 = arith.constant 0 : i32
    return %arg0, %c0_i32 : i32, i32
  }
  func.func @transform_1(%arg0: i32) -> (i32, i32) {
    %c0_i32 = arith.constant 0 : i32
    %c0_i32_0 = arith.constant 0 : i32
    %c0_i32_1 = arith.constant 0 : i32
    return %c0_i32, %c0_i32_0 : i32, i32
  }
  func.func @transform_2(%arg0: i32) -> (i32, i32) {
    %c0_i32 = arith.constant 0 : i32
    %c0_i32_0 = arith.constant 0 : i32
    %c0_i32_1 = arith.constant 0 : i32
    return %c0_i32, %c0_i32_0 : i32, i32
  }
  func.func @transform_3(%arg0: i32) -> (i32, i32) {
    %c0_i32 = arith.constant 0 : i32
    %c0_i32_0 = arith.constant 0 : i32
    %c0_i32_1 = arith.constant 0 : i32
    return %c0_i32, %c0_i32_0 : i32, i32
  }
  func.func @transform_4(%arg0: i32) -> (i32, i32) {
    %c0_i32 = arith.constant 0 : i32
    %c0_i32_0 = arith.constant 0 : i32
    %c0_i32_1 = arith.constant 0 : i32
    return %c0_i32, %c0_i32_0 : i32, i32
  }
  func.func @transform_5(%arg0: i32) -> (i32, i32) {
    %c0_i32 = arith.constant 0 : i32
    %c0_i32_0 = arith.constant 0 : i32
    return %arg0, %c0_i32 : i32, i32
  }
}

</mosaic_0001>

<bundles_post_ra>
// kernel: tpu_custom_call.1
= control target key start
LH: loop header
LB: loop body
LE: loop exit
PB: predicated region body
PF: predicated region fallthrough
CT: control target
= control target key end

     0   :  { %vm45_vm1 = vcmask 261120   ;;  %s287_s14 = smov 127   ;;  %vm233_vm3 = vcmask 7168   ;;  %s360_s1 = inlined_call_operand.vmem [shape: f32[32,2], index: 1, kind: input, shape index: {}]   ;;  %s361_s0 = inlined_call_operand.vmem [shape: f32[16,32], index: 0, kind: input, shape index: {}]   ;;  %s362_s3 = inlined_call_operand.vmem [shape: f32[32,1], index: 3, kind: input, shape index: {}]   ;;  %s363_s4 = inlined_call_operand.<no memory space> [shape: f32[1,1], index: 4, kind: input, shape index: {}]   ;;  %s364_s2 = inlined_call_operand.vmem [shape: f32[1,2], index: 2, kind: input, shape index: {}]   ;;  %s365_s5 = inlined_call_operand.vmem [shape: f32[16,1], index: 5, kind: output, shape index: {}]  }
   0x1   :  { %v37_v0 = vld [vmem:[%s360_s1 + $0x18] sm:$0xff]  ;;  %v36_v1 = vld [vmem:[%s360_s1 + $0x10] sm:$0xff]  ;;  %v22_v2 = vld [vmem:[%s361_s0] sm:$0xff]  ;;  %v10_v20 = vstv %s363_s4 }
   0x2   :  { %260 = vmatprep.subr.mxu0 %v37_v0  ;;  %v23_v3 = vld [vmem:[%s361_s0 + $0x8] sm:$0xff]  ;;  %v26_v5 = vmul.f32 1.442695, %v22_v2  ;;  %v132_v7 = vld [vmem:[%s362_s3 + $0x18] sm:$0xff]  ;;  %v131_v8 = vld [vmem:[%s362_s3 + $0x10] sm:$0xff]  ;;  %vm24_vm0 = vcmp.gt.f32.partialorder %v22_v2, 0.0 }
   0x3   :  { %261 = vmatpush3.msra.mxu0 %v37_v0  ;;  %v35_v4 = vld [vmem:[%s360_s1 + $0x8] sm:$0xff]  ;;  %v28_v6 = vmul.f32 1.442695, %v23_v3  ;;  %v34_v9 = vld [vmem:[%s360_s1] sm:$0xff]  ;;  %271 = vmatprep.subr.mxu1 %v132_v7  ;;  %vm25_vm2 = vcmp.gt.f32.partialorder %v23_v3, 0.0 }
   0x4   :  { %262 = vmatprep.subr.mxu0 %v36_v1  ;;  %283 = vpow2.f32 %v26_v5  ;;  %272 = vmatpush3.msra.mxu1 %v132_v7  ;;  %v130_v10 = vld [vmem:[%s362_s3 + $0x8] sm:$0xff]  ;;  %v129_v11 = vld [vmem:[%s362_s3] sm:$0xff]  ;;  %11 = vst [vmem:[#allocation2] sm:$0x1] %v10_v20 }
   0x5   :  { %263 = vmatpush3.msra.mxu0 %v36_v1  ;;  %285 = vpow2.f32 %v28_v6  ;;  %273 = vmatprep.subr.mxu1 %v131_v8  ;;  %v242_v22 = vld [vmem:[%s364_s2] ss:$0 sm:$0xff] }
   0x6   :  { %264 = vmatprep.subr.mxu0 %v35_v4  ;;  %274 = vmatpush3.msra.mxu1 %v131_v8 }
   0x7   :  { %265 = vmatpush3.msra.mxu0 %v35_v4  ;;  %275 = vmatprep.subr.mxu1 %v130_v10 }
   0x8   :  { %266 = vmatprep.subr.mxu0 %v34_v9  ;;  %276 = vmatpush3.msra.mxu1 %v130_v10 }
   0x9   :  { %267 = vmatpush3.msra.mxu0 %v34_v9  ;;  %277 = vmatprep.subr.mxu1 %v129_v11 }
   0xa   :  { %278 = vmatpush3.msra.mxu1 %v129_v11 }
   0xb   :  { %v245_v27 = vld [vmem:[#allocation2] ss:$0 sm:$0xff] }
  0x11   :  { %v284_v12 = vpop.eup %283 }
  0x12   :  { %v286_v13 = vpop.eup %285  ;;  %v240_v14 = vadd.f32 -1.0, %v284_v12 }
  0x13   :  { %v241_v15 = vadd.f32 -1.0, %v286_v13 }
  0x14   :  { %v32_v16 = vsel %vm24_vm0, %v22_v2, %v240_v14 }
  0x15   :  { %268 = vmatprep.mubr.msk.f32.mxu0 %vm45_vm1, %v32_v16  ;;  %v33_v17 = vsel %vm25_vm2, %v23_v3, %v241_v15  ;;  %v127_v18 = vmul.f32 %v32_v16, %v32_v16 }
  0x16   :  { %269 = vmatmul.mubr.msk.f32.vlgmr.msra.gmra.mxu0 %vm45_vm1, %v33_v17  ;;  %v128_v19 = vmul.f32 %v33_v17, %v33_v17 }
  0x17   :  { %279 = vmatprep.mubr.msk.f32.mxu1 %vm45_vm1, %v127_v18 }
  0x18   :  { %280 = vmatmul.mubr.msk.f32.vlgmr.msra.gmra.mxu1 %vm45_vm1, %v128_v19 }
  0xd6   :  { %v270_v21 = vpop.f32.mrf.mxu0 }
  0xd7   :  { %v124_v25 = vadd.f32 %v270_v21, %v242_v22 }
  0xd8   :  { %v118_v23 = vpop.f32.mrf.mxu0  ;;  %v281_v26 = vpop.f32.mrf.mxu1 }
  0xd9   :  { %v119_v24 = vadd.f32 %v242_v22, %v118_v23  ;;  %v218_v34 = vadd.f32 %v281_v26, %v245_v27 }
  0xda   :  { %v212_v28 = vpop.f32.mrf.mxu1 }
  0xdb   :  { %223 = vrot.lane.b32.xlu0 %v119_v24, %s287_s14  ;;  %v213_v29 = vadd.f32 %v245_v27, %v212_v28 }
  0xdf   :  { %225 = vrot.lane.b32.xlu0 %v124_v25, %s287_s14 }
 0x14d   :  { %v224_v30 = vpop.permute.xlu0 %223 }
 0x14e   :  { %v229_v31 = vmul.f32 %v224_v30, %v119_v24 }
 0x150   :  { %v231_v32 = vadd.f32 %v229_v31, %v213_v29 }
 0x151   :  { %v226_v33 = vpop.permute.xlu0 %225 }
 0x152   :  { %234 = vst.msk [vmem:[%s365_s5] sm:$0xff] %vm233_vm3, %v231_v32  ;;  %v230_v35 = vmul.f32 %v226_v33, %v124_v25 }
 0x154   :  { %v232_v36 = vadd.f32 %v230_v35, %v218_v34 }
 0x156   :  { %235 = vst.msk [vmem:[%s365_s5 + $0x8] sm:$0xff] %vm233_vm3, %v232_v36 }

</bundles_post_ra>
